<compile_context>
chip_gen: v7x
topology: tpu7x:2x2x1
jax: 0.10.0
libtpu: 0.0.40
codegen_flags: <defaults>
</compile_context>

<pallas_src>
import functools

import jax
import jax.numpy as jnp
from jax.experimental import pallas as pl
from jax.experimental.pallas import tpu as pltpu

_LANES = 128
_ROW_ALIGN = 32  # int8 mask min sublane tile is (32, 128)


def _round_up(x, m):
    return ((x + m - 1) // m) * m


def _edge_drop_kernel(vals_ref, keep_ref, out_ref, *, inv_scale):
    # vals_ref: (tile_rows, 128) edge values (native dtype)
    # keep_ref: (tile_rows, 128) int8 Bernoulli keep-mask (1 = keep)
    # out_ref : (tile_rows, 128) masked / rescaled edge values
    v = vals_ref[...]
    keep = keep_ref[...] != 0
    if inv_scale != 1.0:  # compile-time constant; no multiply when not resizing
        v = v * jnp.asarray(inv_scale, dtype=v.dtype)
    out_ref[...] = jnp.where(keep, v, jnp.zeros_like(v))


def sp_adj_edge_drop(idxs, vals, keep_rate, seed, *, resize_val=False,
                     tile_rows=1024, return_mask=True):
    """Edge dropout on a COO sparse adjacency.

    idxs: int32 [2, E] COO indices (returned unchanged).
    vals: [E] edge values.
    keep_rate: static Python float, probability of keeping each edge.
    seed: int PRNG seed.

    Returns (idxs, new_vals, keep_mask):
      new_vals[e] = vals[e] * (1/keep_rate if resize_val else 1)  if kept, else 0
      keep_mask:  bool [E]  (or None when return_mask=False)
    """
    E = vals.shape[0]
    if keep_rate == 1.0:
        mask = jnp.ones((E,), jnp.bool_) if return_mask else None
        return idxs, vals, mask

    # Bernoulli(keep_rate) keep-mask, drawn outside the kernel (the on-chip
    # PRNG primitive is not available in interpret mode).  floor(rand + p) == 1
    # <=> rand < p, so this matches the PyTorch draw distributionally.
    key = jax.random.PRNGKey(seed)
    keep_mask = jax.random.uniform(key, (E,), jnp.float32) < keep_rate
    keep_i8 = keep_mask.astype(jnp.int8)

    # Lane-dense slab: (rows, 128), rows a multiple of 32 (int8 sublane tile).
    rows_needed = max(1, -(-E // _LANES))
    tile_rows = max(_ROW_ALIGN, (int(tile_rows) // _ROW_ALIGN) * _ROW_ALIGN)
    rows = _round_up(rows_needed, _ROW_ALIGN)
    if rows <= tile_rows:
        if rows >= 2 * _ROW_ALIGN:
            # Split into 2 grid steps so the parallel axis can feed both
            # TensorCores on v7x (no-op on v5e/v6e).
            rows = _round_up(rows, 2 * _ROW_ALIGN)
            tile_rows = rows // 2
        else:
            tile_rows = rows
    else:
        rows = _round_up(rows, tile_rows)
    grid_steps = rows // tile_rows
    e_pad = rows * _LANES

    # TODO(synk): the wrapper-side pad/reshape/[:E] slice add extra HBM passes;
    # for very large edge lists return the padded (rows,128) slab directly (or
    # mask only the ragged last tile in-kernel) to keep the kernel's roofline.
    vals_p = jnp.pad(vals, (0, e_pad - E)).reshape(rows, _LANES)
    keep_p = jnp.pad(keep_i8, (0, e_pad - E)).reshape(rows, _LANES)

    inv_scale = (1.0 / float(keep_rate)) if resize_val else 1.0
    kernel = functools.partial(_edge_drop_kernel, inv_scale=inv_scale)

    itemsize = jnp.dtype(vals.dtype).itemsize
    cost = pl.CostEstimate(
        flops=2 * e_pad,                              # select + (optional) scale
        transcendentals=0,
        bytes_accessed=e_pad * (2 * itemsize + 1),    # vals in/out + int8 mask in
    )

    new_vals2d = pl.pallas_call(
        kernel,
        out_shape=jax.ShapeDtypeStruct((rows, _LANES), vals.dtype),
        grid=(grid_steps,),
        in_specs=[
            pl.BlockSpec((tile_rows, _LANES), lambda i: (i, 0)),
            pl.BlockSpec((tile_rows, _LANES), lambda i: (i, 0)),
        ],
        out_specs=pl.BlockSpec((tile_rows, _LANES), lambda i: (i, 0)),
        compiler_params=pltpu.CompilerParams(
            dimension_semantics=("parallel",),
        ),
        cost_estimate=cost,
    )(vals_p, keep_p)

    new_vals = new_vals2d.reshape(e_pad)[:E]
    # TODO(synk): true `idxs[:, mask]` / `vals[mask]` compaction has a
    # data-dependent output length and cannot be expressed as a fixed-shape
    # Pallas output; callers that need compaction apply the returned mask.
    return idxs, new_vals, (keep_mask if return_mask else None)


if __name__ == "__main__":
    # Small deterministic sparse adjacency: 16x16 graph with 300 (possibly
    # duplicate) edges.
    n_nodes, n_edges = 16, 300
    key = jax.random.PRNGKey(0)
    kr, kc, kv = jax.random.split(key, 3)

    rows_idx = jax.random.randint(kr, (n_edges,), 0, n_nodes, dtype=jnp.int32)
    cols_idx = jax.random.randint(kc, (n_edges,), 0, n_nodes, dtype=jnp.int32)
    idxs = jnp.stack([rows_idx, cols_idx])                            # [2, E]
    vals = jax.random.uniform(kv, (n_edges,), jnp.float32, 0.1, 1.0)  # [E]

    keep_rate = 0.7

    # resize_val=False (module default)
    out_idxs, new_vals, mask = sp_adj_edge_drop(
        idxs, vals, keep_rate, seed=42, resize_val=False)
    new_vals = jax.block_until_ready(new_vals)
    mask = jax.block_until_ready(mask)

    assert out_idxs.shape == (2, n_edges)
    assert new_vals.shape == (n_edges,)
    assert mask.shape == (n_edges,) and mask.dtype == jnp.bool_
    assert jnp.allclose(new_vals, jnp.where(mask, vals, 0.0), atol=1e-6)
    kept = int(mask.sum())
    assert 0 < kept < n_edges  # Bernoulli(0.7) over 300 edges: neither all nor none

    # resize_val=True (kept values rescaled by 1/keep_rate)
    _, new_vals_r, mask_r = sp_adj_edge_drop(
        idxs, vals, keep_rate, seed=7, resize_val=True)
    new_vals_r = jax.block_until_ready(new_vals_r)
    assert jnp.allclose(new_vals_r, jnp.where(mask_r, vals / keep_rate, 0.0),
                        atol=1e-5, rtol=1e-5)

    # mask-free fast path (no mask returned; dropped edges are simply zero).
    _, new_vals_nm, no_mask = sp_adj_edge_drop(
        idxs, vals, keep_rate, seed=42, resize_val=False, return_mask=False)
    new_vals_nm = jax.block_until_ready(new_vals_nm)
    assert no_mask is None
    assert jnp.allclose(new_vals_nm, new_vals, atol=1e-6)

    # keep_rate == 1.0 fast path returns the adjacency unchanged.
    _, same_vals, full_mask = sp_adj_edge_drop(idxs, vals, 1.0, seed=0)
    assert jnp.allclose(same_vals, vals)
    assert bool(full_mask.all())

    print("KERNEL_OK")
</pallas_src>

<mosaic_0001>
module attributes {stable_mosaic.version = 11 : i64} {
  func.func @_edge_drop_kernel(%arg0: i32, %arg1: memref<32x128xf32, #tpu.memory_space<vmem>>, %arg2: memref<32x128xi8, #tpu.memory_space<vmem>>, %arg3: memref<32x128xf32, #tpu.memory_space<vmem>>) attributes {dimension_semantics = [#tpu.dimension_semantics<parallel>], iteration_bounds = array<i64: 1>, scalar_prefetch = 0 : i64, scratch_operands = 0 : i64, tpu.core_type = #tpu.core_type<tc>, window_params = [{transform_indices = @transform_0, window_bounds = array<i64: 32, 128>}, {transform_indices = @transform_1, window_bounds = array<i64: 32, 128>}, {transform_indices = @transform_2, window_bounds = array<i64: 32, 128>}]} {
    %c0 = arith.constant 0 : index
    %c0_0 = arith.constant 0 : index
    %0 = vector.load %arg1[%c0, %c0_0] : memref<32x128xf32, #tpu.memory_space<vmem>>, vector<32x128xf32>
    %c0_1 = arith.constant 0 : index
    %c0_2 = arith.constant 0 : index
    %1 = vector.load %arg2[%c0_1, %c0_2] : memref<32x128xi8, #tpu.memory_space<vmem>>, vector<32x128xi8>
    %c0_i8 = arith.constant 0 : i8
    %2 = vector.broadcast %c0_i8 : i8 to vector<32x128xi8>
    %3 = arith.cmpi ne, %1, %2 : vector<32x128xi8>
    %cst = arith.constant 0.000000e+00 : f32
    %4 = vector.broadcast %cst : f32 to vector<32x128xf32>
    %5 = arith.select %3, %0, %4 : vector<32x128xi1>, vector<32x128xf32>
    %c0_3 = arith.constant 0 : index
    %c0_4 = arith.constant 0 : index
    %6 = vector.load %arg3[%c0_3, %c0_4] : memref<32x128xf32, #tpu.memory_space<vmem>>, vector<32x128xf32>
    tpu.vector_store %arg3[%c0_3, %c0_4], %5 {strides = array<i32>} : memref<32x128xf32, #tpu.memory_space<vmem>>, vector<32x128xf32>,
    return
  }
  func.func @transform_0(%arg0: i32) -> (i32, i32) {
    %c0_i32 = arith.constant 0 : i32
    %c0_i32_0 = arith.constant 0 : i32
    return %arg0, %c0_i32 : i32, i32
  }
  func.func @transform_1(%arg0: i32) -> (i32, i32) {
    %c0_i32 = arith.constant 0 : i32
    %c0_i32_0 = arith.constant 0 : i32
    return %arg0, %c0_i32 : i32, i32
  }
  func.func @transform_2(%arg0: i32) -> (i32, i32) {
    %c0_i32 = arith.constant 0 : i32
    %c0_i32_0 = arith.constant 0 : i32
    return %arg0, %c0_i32 : i32, i32
  }
}

</mosaic_0001>

<bundles_post_ra>
// kernel: tpu_custom_call.1
= control target key start
LH: loop header
LB: loop body
LE: loop exit
PB: predicated region body
PF: predicated region fallthrough
CT: control target
= control target key end

     0   :  { %7 = vsyncpa [#allocation3], 0  ;;  %s242_s0 = inlined_call_operand.hbm [shape: f32[32,128], index: 0, kind: input, shape index: {}]   ;;  %s243_s1 = inlined_call_operand.hbm [shape: s8[32,128], index: 1, kind: input, shape index: {}]   ;;  %s244_s2 = inlined_call_operand.hbm [shape: f32[32,128], index: 2, kind: output, shape index: {}]  }
   0x1   :  { %8 = vsyncpa [#allocation6], 0 }
   0x2   :  { %9 = vsyncpa [#allocation4], 0  ;;  %s179_s9 = smov [#allocation2]   ;;  %s107_s13 = scalar_lea.hbm %s242_s0, 512 }
   0x3   :  { %s15_s10 = sshll.u32 %s179_s9, 4  ;;  %p108_p0 = scmp.ne.s32.totalorder %s242_s0, %s107_s13  ;;  %s16_s10 = int_to_ptr.vmem [resolvable:$true] %s15_s10 }
   0x4   :  { %p111_p1 = scmp.lt.u32.totalorder %s107_s13, %s242_s0 }
   0x6   :  { %p113_p2 = pnand %p111_p1, %p108_p0 }
   0x8   :  { %116 = shalt.err (!%p113_p2)
}
   0x9   :  { %s117_s18 = scalar_lea.vmem %s16_s10, 512  ;;  %p122_p4 = scmp.lt.s32.totalorder %s16_s10, %s16_s10 }
   0xa   :  { %p118_p3 = scmp.ne.s32.totalorder %s16_s10, %s117_s18  ;;  %p123_p5 = scmp.lt.s32.totalorder %s117_s18, %s117_s18 }
   0xc   :  { %p124_p6 = por %p123_p5, %p122_p4 }
   0xe   :  { %p125_p7 = pnand %p124_p6, %p118_p3 }
  0x10   :  { %128 = shalt.err (!%p125_p7)
}
  0x11   :  { %s180_s19 = smov 128   ;;  %s181_s20 = smov 8  }
  0x12   :  { %21 = dma.hbm_to_vmem [thread:$0]  %s242_s0, 512, %s16_s10, [#allocation3], %s180_s19, %s180_s19, %s181_s20  }
  0x13   :  { %s182_s23 = smov [#allocation5]   ;;  %s129_s27 = scalar_lea.hbm %s243_s1, 128 }
  0x14   :  { %s28_s24 = sshll.u32 %s182_s23, 4  ;;  %p130_p8 = scmp.ne.s32.totalorder %s243_s1, %s129_s27  ;;  %s29_s24 = int_to_ptr.vmem [resolvable:$true] %s28_s24 }
  0x15   :  { %p133_p9 = scmp.lt.u32.totalorder %s129_s27, %s243_s1 }
  0x17   :  { %p135_p10 = pnand %p133_p9, %p130_p8 }
  0x19   :  { %138 = shalt.err (!%p135_p10)
}
  0x1a   :  { %s139_s4 = scalar_lea.vmem %s29_s24, 128  ;;  %p144_p12 = scmp.lt.s32.totalorder %s29_s24, %s29_s24 }
  0x1b   :  { %p140_p11 = scmp.ne.s32.totalorder %s29_s24, %s139_s4  ;;  %p145_p13 = scmp.lt.s32.totalorder %s139_s4, %s139_s4 }
  0x1d   :  { %p146_p0 = por %p145_p13, %p144_p12 }
  0x1f   :  { %p147_p1 = pnand %p146_p0, %p140_p11 }
  0x21   :  { %150 = shalt.err (!%p147_p1)
}
  0x22   :  { %31 = dma.hbm_to_vmem [thread:$0]  %s243_s1, 128, %s29_s24, [#allocation6]  }
  0x23   :  { %173 = dma.done.wait [#allocation3], 512  }
  0x24   :  { %174 = vsyncadd [#allocation3], 4294966784 }
  0x25   :  { %175 = dma.done.wait [#allocation6], 128  }
  0x26   :  { %176 = vsyncadd [#allocation6], 4294967168  ;;  %v44_v0 = vld [vmem:[#allocation5] sm:$0xff]  ;;  %v183_v1 = vmov 0   ;;  %v41_v20 = vld [vmem:[#allocation2 + $0x8] sm:$0xff]  ;;  %s184_s1 = smov [#allocation7]  }
  0x27   :  { %vm45_vm0 = vnez %v44_v0  ;;  %v40_v18 = vld [vmem:[#allocation2] sm:$0xff]  ;;  %v42_v22 = vld [vmem:[#allocation2 + $0x10] sm:$0xff]  ;;  %s88_s6 = sshll.u32 %s184_s1, 4  ;;  %v43_v25 = vld [vmem:[#allocation2 + $0x18] sm:$0xff]  ;;  %s89_s6 = int_to_ptr.vmem [resolvable:$true] %s88_s6 }
  0x28   :  { %v46_v2 = vsel %vm45_vm0, 16843009, %v183_v1  ;;  %s151_s7 = scalar_lea.vmem %s89_s6, 512  ;;  %p156_p3 = scmp.lt.s32.totalorder %s89_s6, %s89_s6 }
  0x29   :  { %v47_v3 = vunpack.c.0.s8 %v46_v2  ;;  %v48_v4 = vunpack.c.1.s8 %v46_v2  ;;  %v49_v5 = vunpack.c.2.s8 %v46_v2  ;;  %v50_v6 = vunpack.c.3.s8 %v46_v2  ;;  %p152_p2 = scmp.ne.s32.totalorder %s89_s6, %s151_s7  ;;  %p157_p4 = scmp.lt.s32.totalorder %s151_s7, %s151_s7 }
  0x2b   :  { %v51_v7 = vpack.c.b16 %v47_v3, %v47_v3  ;;  %v53_v8 = vpack.c.b16 %v48_v4, %v48_v4  ;;  %v55_v9 = vpack.c.b16 %v49_v5, %v49_v5  ;;  %v57_v10 = vpack.c.b16 %v50_v6, %v50_v6  ;;  %p158_p5 = por %p157_p4, %p156_p3 }
  0x2d   :  { %v52_v11 = vpack.c.b8 %v51_v7, %v51_v7  ;;  %v54_v12 = vpack.c.b8 %v53_v8, %v53_v8  ;;  %v56_v13 = vpack.c.b8 %v55_v9, %v55_v9  ;;  %v58_v14 = vpack.c.b8 %v57_v10, %v57_v10  ;;  %p159_p6 = pnand %p158_p5, %p152_p2 }
  0x2f   :  { %vm59_vm1 = vnez %v52_v11  ;;  %vm60_vm2 = vnez %v54_v12  ;;  %vm61_vm3 = vnez %v56_v13  ;;  %vm62_vm4 = vnez %v58_v14 }
  0x30   :  { %v63_v15 = vsel %vm59_vm1, 16843009, %v183_v1  ;;  %v64_v16 = vsel %vm60_vm2, 16843009, %v183_v1  ;;  %v65_v17 = vsel %vm61_vm3, 16843009, %v183_v1 }
  0x31   :  { %v67_v19 = vunpack.c.0.s8 %v63_v15  ;;  %v68_v21 = vunpack.c.0.s8 %v64_v16  ;;  %v69_v23 = vunpack.c.0.s8 %v65_v17  ;;  %v66_v24 = vsel %vm62_vm4, 16843009, %v183_v1 }
  0x32   :  { %v70_v26 = vunpack.c.0.s8 %v66_v24 }
  0x33   :  { %vm71_vm5 = vcmp.ne.s32.totalorder %v67_v19, 0  ;;  %vm72_vm6 = vcmp.ne.s32.totalorder %v68_v21, 0  ;;  %vm73_vm7 = vcmp.ne.s32.totalorder %v69_v23, 0 }
  0x34   :  { %v75_v27 = vsel %vm71_vm5, %v40_v18, 0.0  ;;  %v76_v28 = vsel %vm72_vm6, %v41_v20, 0.0  ;;  %v77_v29 = vsel %vm73_vm7, %v42_v22, 0.0  ;;  %vm74_vm8 = vcmp.ne.s32.totalorder %v70_v26, 0 }
  0x35   :  { %79 = vst [vmem:[#allocation7] sm:$0xff] %v75_v27  ;;  %80 = vst [vmem:[#allocation7 + $0x8] sm:$0xff] %v76_v28  ;;  %v78_v30 = vsel %vm74_vm8, %v43_v25, 0.0 }
  0x36   :  { %81 = vst [vmem:[#allocation7 + $0x10] sm:$0xff] %v77_v29  ;;  %82 = vst [vmem:[#allocation7 + $0x18] sm:$0xff] %v78_v30 }
  0x37   :  { %162 = shalt.err (!%p159_p6)
}
  0x38   :  { %s163_s10 = scalar_lea.hbm %s244_s2, 512 }
  0x39   :  { %p164_p7 = scmp.ne.s32.totalorder %s244_s2, %s163_s10  ;;  %p167_p8 = scmp.lt.u32.totalorder %s163_s10, %s244_s2 }
  0x3b   :  { %p169_p9 = pnand %p167_p8, %p164_p7 }
  0x3d   :  { %172 = shalt.err (!%p169_p9)
}
  0x3e   :  { %94 = dma.vmem_to_hbm [thread:$0]  %s89_s6, 512, %s244_s2, [#allocation4], %s180_s19, %s180_s19, %s181_s20  }
  0x3f   :  { %177 = dma.done.wait [#allocation4], 512  }
  0x40   :  { %178 = vsyncadd [#allocation4], 4294966784 }
  0x41   :  { %98 = vsyncpa [#allocation3], 1 }
  0x42   :  { %99 = vsyncpa [#allocation6], 1 }
  0x43   :  { %100 = vsyncpa [#allocation4], 1 }

</bundles_post_ra>
